<compile_context>
chip_gen: v5e
topology: v5e:2x2
jax: 0.10.0
libtpu: 0.0.40
codegen_flags: <defaults>
</compile_context>

<pallas_src>
import functools

import numpy as np
import jax
import jax.numpy as jnp
from jax import lax
from jax.experimental import pallas as pl
from jax.experimental.pallas import tpu as pltpu


def _largest_divisor_at_most(L, cap):
    t = max(1, min(L, cap))
    while L % t:
        t -= 1
    return t


def _vmem_capacity_bytes():
    try:
        return int(pltpu.get_tpu_info().vmem_capacity_bytes)
    except Exception:
        return 64 * 1024 * 1024   # conservative fallback: v7x per-TensorCore VMEM


def _mamba_kernel(x_ref, w_in_ref, w_conv_ref, a_neg_ref, b_en_ref, b_ne_ref,
                  c_ne_ref, d_ref, w_out_ref, o_ref, y_scr, *,
                  expanded_dim, d_state, d_conv, t_chunk):
    E, N, K, T = expanded_dim, d_state, d_conv, t_chunk
    L, _ = x_ref.shape
    n_chunks = L // T

    x32 = x_ref[...]                                      # (L, dim) f32, residual
    xb = x32.astype(jnp.bfloat16)

    # ---- fused in_proj: one bf16 MXU pass, split columns + sigmoid gate ---------
    proj = jnp.dot(xb, w_in_ref[...],
                   preferred_element_type=jnp.float32)    # (L, 2E)
    u = proj[:, :E] * jax.nn.sigmoid(proj[:, E:])         # (L, E)

    # ---- causal depthwise conv1d along time via XLU rolls, then SiLU ------------
    # conv[t] = sum_s w[K-1-s] * u[t-s]; roll runs on the otherwise-idle XLU slot,
    # the iota mask zeroes the wrapped rows (t < s).  No zero-pad concatenate.
    wc = w_conv_ref[...]                                   # (K, E) f32
    conv = u * wc[K - 1:K, :]                              # s = 0 term
    row_idx = lax.broadcasted_iota(jnp.int32, (L, E), 0)
    for s in range(1, K):                                  # K tiny & static
        shifted = jnp.where(row_idx >= s, pltpu.roll(u, shift=s, axis=0), 0.0)
        conv = conv + shifted * wc[K - 1 - s:K - s, :]
    xs = conv * jax.nn.sigmoid(conv)                       # SiLU, (L, E)

    # ---- delta = sigmoid(xs @ B), kept in f32 (errors compound through exp) -----
    delta = jax.nn.sigmoid(
        jnp.dot(xs, b_en_ref[...], preferred_element_type=jnp.float32))  # (L, N)

    a_neg = a_neg_ref[...]                                 # (N, E) = (-exp(A)).T
    b_ne = b_ne_ref[...]                                   # (N, E)
    c_ne = c_ne_ref[...]                                   # (N, E)

    # ---- selective scan: chunked log-depth associative scan ---------------------
    # State h is (N, E): E (large dim) is lane-dense.  Combine rule for the affine
    # maps x -> a*x + b is (a2,b2)∘(a1,b1) = (a2*a1, a2*b1 + b2); a Hillis-Steele
    # inclusive scan over the chunk yields every h_t in ~2*log2(T) VPU passes.
    h_carry = jnp.zeros((N, E), jnp.float32)
    for c in range(n_chunks):                              # static unroll over chunks
        d_c = delta[c * T:(c + 1) * T, :]                  # (T, N)
        u_c = xs[c * T:(c + 1) * T, :]                     # (T, E)
        a = jnp.exp(a_neg[None] * d_c[:, :, None])         # (T, N, E), one EUP pass
        b = (d_c[:, :, None] * b_ne[None]) * u_c[:, None, :]   # (T, N, E)

        step = 1
        while step < T:                                    # log-depth scan
            a_prev = jnp.concatenate(
                [jnp.ones((step, N, E), jnp.float32), a[:T - step]], axis=0)
            b_prev = jnp.concatenate(
                [jnp.zeros((step, N, E), jnp.float32), b[:T - step]], axis=0)
            b = a * b_prev + b
            a = a * a_prev
            step *= 2

        h_all = b + a * h_carry[None]                      # all h_t of this chunk
        h_carry = h_all[T - 1]
        # Deferred C-contraction: one vectorized sublane reduce per chunk.
        y_scr[c * T:(c + 1) * T, :] = jnp.sum(c_ne[None] * h_all, axis=1)   # (T, E)

    # ---- skip term, out_proj (bf16 MXU), residual --------------------------------
    y = y_scr[...] + d_ref[...] * xs                       # (L, E)
    out = jnp.dot(y.astype(jnp.bfloat16), w_out_ref[...],
                  preferred_element_type=jnp.float32)      # (L, dim)
    o_ref[...] = (out + x32).astype(o_ref.dtype)


def mamba_forward(x, params, *, chunk_buffer_budget=4 << 20):
    B, L, dim = x.shape
    E, N = params["A"].shape
    K = params["w_conv"].shape[0]

    # Chunk length: the scan keeps ~3 live (T, N, E) f32 buffers per chunk; choose
    # the largest divisor of L keeping them under the budget (and <= 128 steps).
    per_step = 3 * N * E * 4
    cap = max(8, min(128, chunk_buffer_budget // per_step))
    T = _largest_divisor_at_most(L, cap)

    # ---- wrapper-side weight prep (once per call, outside the kernel) -----------
    w_in_b = params["w_in"].astype(jnp.bfloat16)            # (dim, 2E) fused in_proj
    w_out_b = params["w_out"].astype(jnp.bfloat16)          # (E, dim)
    b_en = params["B"].astype(jnp.float32)                  # (E, N) f32 delta matmul
    a_neg_ne = (-jnp.exp(params["A"])).T.astype(jnp.float32)   # (N, E) precomputed
    b_ne = params["B"].T.astype(jnp.float32)                # (N, E) scan layout
    c_ne = params["C"].T.astype(jnp.float32)                # (N, E)
    w_conv = params["w_conv"].astype(jnp.float32)           # (K, E)
    d_vec = params["D"].reshape(1, E).astype(jnp.float32)

    # ---- VMEM budget: generation-aware cap (<= 85% of physical per-core VMEM) ---
    f32, bf16 = 4, 2
    weight_bytes = (dim * 2 * E + E * dim) * bf16 + (K * E + 4 * N * E + E) * f32
    io_bytes = 2 * 2 * L * dim * f32                         # x + out, double-buffered
    act_bytes = L * (2 * E + 3 * E + N + E) * f32            # proj, u/conv/xs, delta, y
    chunk_bytes = 3 * T * N * E * f32
    scratch_bytes = L * E * f32
    est = weight_bytes + io_bytes + act_bytes + chunk_bytes + scratch_bytes
    phys = _vmem_capacity_bytes()
    vmem_limit = int(min(int(0.85 * phys), max(32 << 20, 2 * est)))

    def wspec(shape):
        # Constant across the batch grid -> single buffer (halves weight footprint).
        return pl.BlockSpec(shape, lambda b: (0, 0), pipeline_mode=pl.Buffered(1))

    kernel = functools.partial(
        _mamba_kernel, expanded_dim=E, d_state=N, d_conv=K, t_chunk=T)

    return pl.pallas_call(
        kernel,
        out_shape=jax.ShapeDtypeStruct((B, L, dim), x.dtype),
        grid_spec=pltpu.PrefetchScalarGridSpec(
            num_scalar_prefetch=0,
            grid=(B,),
            in_specs=[
                pl.BlockSpec((None, L, dim), lambda b: (b, 0, 0)),   # x (per batch)
                wspec((dim, 2 * E)),        # fused in_proj weight (bf16)
                wspec((K, E)),              # depthwise conv weight
                wspec((N, E)),              # -exp(A), scan layout
                wspec((E, N)),              # B (E,N) f32 for the delta matmul
                wspec((N, E)),              # B (N,E), scan layout
                wspec((N, E)),              # C (N,E)
                wspec((1, E)),              # D
                wspec((E, dim)),            # out_proj weight (bf16)
            ],
            out_specs=pl.BlockSpec((None, L, dim), lambda b: (b, 0, 0)),
            scratch_shapes=[pltpu.VMEM((L, E), jnp.float32)],        # y_scan
        ),
        compiler_params=pltpu.CompilerParams(
            dimension_semantics=("parallel",),      # batch rows are independent
            vmem_limit_bytes=vmem_limit,
        ),
    )(x, w_in_b, w_conv, a_neg_ne, b_en, b_ne, c_ne, d_vec, w_out_b)


def mamba_ref_np(x, p):
    """Pure-numpy (f32) reference matching the PyTorch MambaBlock.forward semantics."""
    x = np.asarray(x, np.float32)
    p = {k: np.asarray(v, np.float32) for k, v in p.items()}
    Bsz, L, dim = x.shape
    K, E = p["w_conv"].shape
    N = p["A"].shape[1]
    sig = lambda z: 1.0 / (1.0 + np.exp(-z))

    proj = x @ p["w_in"]                                      # (B, L, 2E)
    u = proj[..., :E] * sig(proj[..., E:])
    u_pad = np.concatenate([np.zeros((Bsz, K - 1, E), np.float32), u], axis=1)
    conv = np.zeros((Bsz, L, E), np.float32)
    for k in range(K):
        conv += u_pad[:, k:k + L, :] * p["w_conv"][k][None, None, :]
    xs = conv * sig(conv)

    A = -np.exp(p["A"])
    delta = sig(np.einsum("ble,en->bln", xs, p["B"]))
    h = np.zeros((Bsz, E, N), np.float32)
    ys = np.zeros((Bsz, L, E), np.float32)
    for t in range(L):
        A_bar = np.exp(A[None] * delta[:, t, None, :])
        B_bar = delta[:, t, None, :] * p["B"][None]
        h = A_bar * h + B_bar * xs[:, t, :, None]
        ys[:, t, :] = np.einsum("ben,en->be", h, p["C"])
    y = ys + p["D"][None, None, :] * xs
    return y @ p["w_out"] + x


if __name__ == "__main__":
    # MambaBlock config: dim=8, d_state=16, d_conv=4, expand=2 -> E=16
    dim, d_state, d_conv, expand = 8, 16, 4, 2
    E = expand * dim
    batch, seq_len = 2, 8

    keys = jax.random.split(jax.random.PRNGKey(0), 7)
    params = {
        "w_in":   0.3 * jax.random.normal(keys[0], (dim, 2 * E), jnp.float32),
        "w_conv": 0.3 * jax.random.normal(keys[1], (d_conv, E), jnp.float32),
        "A":      0.5 * jax.random.normal(keys[2], (E, d_state), jnp.float32),
        "B":      0.3 * jax.random.normal(keys[3], (E, d_state), jnp.float32),
        "C":      0.3 * jax.random.normal(keys[4], (E, d_state), jnp.float32),
        "D":      jnp.zeros((E,), jnp.float32),   # module uses nn.init.zeros_(D)
        "w_out":  0.3 * jax.random.normal(keys[5], (E, dim), jnp.float32),
    }
    x = jax.random.normal(keys[6], (batch, seq_len, dim), jnp.float32)

    out = jax.block_until_ready(mamba_forward(x, params))

    ref = mamba_ref_np(x, params)
    # bf16 in/out projections with f32 accumulation -> loosened tolerance vs f32 ref.
    np.testing.assert_allclose(np.asarray(out), ref, rtol=2e-2, atol=2e-2)

    print("KERNEL_OK")
</pallas_src>

<mosaic_0001>
module attributes {stable_mosaic.version = 11 : i64} {
  func.func @_mamba_kernel(%arg0: i32, %arg1: memref<1x8x8xf32, #tpu.memory_space<vmem>>, %arg2: memref<8x32xbf16, #tpu.memory_space<vmem>>, %arg3: memref<4x16xf32, #tpu.memory_space<vmem>>, %arg4: memref<16x16xf32, #tpu.memory_space<vmem>>, %arg5: memref<16x16xf32, #tpu.memory_space<vmem>>, %arg6: memref<16x16xf32, #tpu.memory_space<vmem>>, %arg7: memref<16x16xf32, #tpu.memory_space<vmem>>, %arg8: memref<1x16xf32, #tpu.memory_space<vmem>>, %arg9: memref<16x8xbf16, #tpu.memory_space<vmem>>, %arg10: memref<1x8x8xf32, #tpu.memory_space<vmem>>, %arg11: memref<8x16xf32, #tpu.memory_space<vmem>>) attributes {dimension_semantics = [#tpu.dimension_semantics<parallel>], iteration_bounds = array<i64: 2>, scalar_prefetch = 0 : i64, scratch_operands = 1 : i64, tpu.core_type = #tpu.core_type<tc>, window_params = [{transform_indices = @transform_0, window_bounds = array<i64: 1, 8, 8>}, {pipeline_mode = #tpu.pipeline_mode<synchronous>, transform_indices = @transform_1, window_bounds = array<i64: 8, 32>}, {pipeline_mode = #tpu.pipeline_mode<synchronous>, transform_indices = @transform_2, window_bounds = array<i64: 4, 16>}, {pipeline_mode = #tpu.pipeline_mode<synchronous>, transform_indices = @transform_3, window_bounds = array<i64: 16, 16>}, {pipeline_mode = #tpu.pipeline_mode<synchronous>, transform_indices = @transform_4, window_bounds = array<i64: 16, 16>}, {pipeline_mode = #tpu.pipeline_mode<synchronous>, transform_indices = @transform_5, window_bounds = array<i64: 16, 16>}, {pipeline_mode = #tpu.pipeline_mode<synchronous>, transform_indices = @transform_6, window_bounds = array<i64: 16, 16>}, {pipeline_mode = #tpu.pipeline_mode<synchronous>, transform_indices = @transform_7, window_bounds = array<i64: 1, 16>}, {pipeline_mode = #tpu.pipeline_mode<synchronous>, transform_indices = @transform_8, window_bounds = array<i64: 16, 8>}, {transform_indices = @transform_9, window_bounds = array<i64: 1, 8, 8>}]} {
    %c0 = arith.constant 0 : index
    %c0_0 = arith.constant 0 : index
    %c0_1 = arith.constant 0 : index
    %0 = vector.load %arg1[%c0, %c0_0, %c0_1] : memref<1x8x8xf32, #tpu.memory_space<vmem>>, vector<1x8x8xf32>
    %1 = vector.shape_cast %0 : vector<1x8x8xf32> to vector<8x8xf32>
    %2 = arith.truncf %1 : vector<8x8xf32> to vector<8x8xbf16>
    %c0_2 = arith.constant 0 : index
    %c0_3 = arith.constant 0 : index
    %3 = vector.load %arg2[%c0_2, %c0_3] : memref<8x32xbf16, #tpu.memory_space<vmem>>, vector<8x32xbf16>
    %cst = arith.constant dense<0.000000e+00> : vector<8x32xf32>
    %4 = tpu.matmul %2, %3, %cst {dimension_numbers = #tpu.dot_dimension_numbers<[1], [0], [0], [1], [0, 0, 1, 1], [], []>} : vector<8x8xbf16>, vector<8x32xbf16>, vector<8x32xf32> -> vector<8x32xf32>
    %5 = vector.extract_strided_slice %4 {offsets = [0, 0], sizes = [8, 16], strides = [1, 1]} : vector<8x32xf32> to vector<8x16xf32>
    %6 = vector.extract_strided_slice %4 {offsets = [0, 16], sizes = [8, 16], strides = [1, 1]} : vector<8x32xf32> to vector<8x16xf32>
    %7 = arith.negf %6 : vector<8x16xf32>
    %8 = math.exp %7 : vector<8x16xf32>
    %cst_4 = arith.constant 1.000000e+00 : f32
    %9 = vector.broadcast %cst_4 : f32 to vector<8x16xf32>
    %10 = arith.addf %9, %8 : vector<8x16xf32>
    %11 = arith.divf %9, %10 : vector<8x16xf32>
    %12 = arith.mulf %5, %11 : vector<8x16xf32>
    %c0_5 = arith.constant 0 : index
    %c0_6 = arith.constant 0 : index
    %13 = vector.load %arg3[%c0_5, %c0_6] : memref<4x16xf32, #tpu.memory_space<vmem>>, vector<4x16xf32>
    %14 = vector.extract_strided_slice %13 {offsets = [3, 0], sizes = [1, 16], strides = [1, 1]} : vector<4x16xf32> to vector<1x16xf32>
    %15 = vector.broadcast %14 : vector<1x16xf32> to vector<8x16xf32>
    %16 = arith.mulf %12, %15 : vector<8x16xf32>
    %17 = tpu.iota {dimensions = array<i32: 0>} : vector<8x16xi32>
    %c1_i32 = arith.constant 1 : i32
    %18 = vector.broadcast %c1_i32 : i32 to vector<8x16xi32>
    %19 = arith.cmpi sge, %17, %18 : vector<8x16xi32>
    %c1_i32_7 = arith.constant 1 : i32
    %20 = tpu.dynamic_rotate %12 by %c1_i32_7 dim 0 : vector<8x16xf32>, i32 -> vector<8x16xf32>
    %cst_8 = arith.constant 0.000000e+00 : f32
    %21 = vector.broadcast %cst_8 : f32 to vector<8x16xf32>
    %22 = arith.select %19, %20, %21 : vector<8x16xi1>, vector<8x16xf32>
    %23 = vector.extract_strided_slice %13 {offsets = [2, 0], sizes = [1, 16], strides = [1, 1]} : vector<4x16xf32> to vector<1x16xf32>
    %24 = vector.broadcast %23 : vector<1x16xf32> to vector<8x16xf32>
    %25 = arith.mulf %22, %24 : vector<8x16xf32>
    %26 = arith.addf %16, %25 : vector<8x16xf32>
    %c2_i32 = arith.constant 2 : i32
    %27 = vector.broadcast %c2_i32 : i32 to vector<8x16xi32>
    %28 = arith.cmpi sge, %17, %27 : vector<8x16xi32>
    %c2_i32_9 = arith.constant 2 : i32
    %29 = tpu.dynamic_rotate %12 by %c2_i32_9 dim 0 : vector<8x16xf32>, i32 -> vector<8x16xf32>
    %cst_10 = arith.constant 0.000000e+00 : f32
    %30 = vector.broadcast %cst_10 : f32 to vector<8x16xf32>
    %31 = arith.select %28, %29, %30 : vector<8x16xi1>, vector<8x16xf32>
    %32 = vector.extract_strided_slice %13 {offsets = [1, 0], sizes = [1, 16], strides = [1, 1]} : vector<4x16xf32> to vector<1x16xf32>
    %33 = vector.broadcast %32 : vector<1x16xf32> to vector<8x16xf32>
    %34 = arith.mulf %31, %33 : vector<8x16xf32>
    %35 = arith.addf %26, %34 : vector<8x16xf32>
    %c3_i32 = arith.constant 3 : i32
    %36 = vector.broadcast %c3_i32 : i32 to vector<8x16xi32>
    %37 = arith.cmpi sge, %17, %36 : vector<8x16xi32>
    %c3_i32_11 = arith.constant 3 : i32
    %38 = tpu.dynamic_rotate %12 by %c3_i32_11 dim 0 : vector<8x16xf32>, i32 -> vector<8x16xf32>
    %cst_12 = arith.constant 0.000000e+00 : f32
    %39 = vector.broadcast %cst_12 : f32 to vector<8x16xf32>
    %40 = arith.select %37, %38, %39 : vector<8x16xi1>, vector<8x16xf32>
    %41 = vector.extract_strided_slice %13 {offsets = [0, 0], sizes = [1, 16], strides = [1, 1]} : vector<4x16xf32> to vector<1x16xf32>
    %42 = vector.broadcast %41 : vector<1x16xf32> to vector<8x16xf32>
    %43 = arith.mulf %40, %42 : vector<8x16xf32>
    %44 = arith.addf %35, %43 : vector<8x16xf32>
    %45 = arith.negf %44 : vector<8x16xf32>
    %46 = math.exp %45 : vector<8x16xf32>
    %cst_13 = arith.constant 1.000000e+00 : f32
    %47 = vector.broadcast %cst_13 : f32 to vector<8x16xf32>
    %48 = arith.addf %47, %46 : vector<8x16xf32>
    %49 = arith.divf %47, %48 : vector<8x16xf32>
    %50 = arith.mulf %44, %49 : vector<8x16xf32>
    %c0_14 = arith.constant 0 : index
    %c0_15 = arith.constant 0 : index
    %51 = vector.load %arg5[%c0_14, %c0_15] : memref<16x16xf32, #tpu.memory_space<vmem>>, vector<16x16xf32>
    %cst_16 = arith.constant dense<0.000000e+00> : vector<8x16xf32>
    %52 = tpu.matmul %50, %51, %cst_16 {dimension_numbers = #tpu.dot_dimension_numbers<[1], [0], [0], [1], [0, 0, 1, 1], [], []>} : vector<8x16xf32>, vector<16x16xf32>, vector<8x16xf32> -> vector<8x16xf32>
    %53 = arith.negf %52 : vector<8x16xf32>
    %54 = math.exp %53 : vector<8x16xf32>
    %cst_17 = arith.constant 1.000000e+00 : f32
    %55 = vector.broadcast %cst_17 : f32 to vector<8x16xf32>
    %56 = arith.addf %55, %54 : vector<8x16xf32>
    %57 = arith.divf %55, %56 : vector<8x16xf32>
    %c0_18 = arith.constant 0 : index
    %c0_19 = arith.constant 0 : index
    %58 = vector.load %arg4[%c0_18, %c0_19] : memref<16x16xf32, #tpu.memory_space<vmem>>, vector<16x16xf32>
    %c0_20 = arith.constant 0 : index
    %c0_21 = arith.constant 0 : index
    %59 = vector.load %arg6[%c0_20, %c0_21] : memref<16x16xf32, #tpu.memory_space<vmem>>, vector<16x16xf32>
    %c0_22 = arith.constant 0 : index
    %c0_23 = arith.constant 0 : index
    %60 = vector.load %arg7[%c0_22, %c0_23] : memref<16x16xf32, #tpu.memory_space<vmem>>, vector<16x16xf32>
    %cst_24 = arith.constant 0.000000e+00 : f32
    %61 = vector.broadcast %cst_24 : f32 to vector<16x16xf32>
    %62 = vector.shape_cast %58 : vector<16x16xf32> to vector<1x16x16xf32>
    %63 = vector.shape_cast %57 : vector<8x16xf32> to vector<8x16x1xf32>
    %64 = vector.broadcast %62 : vector<1x16x16xf32> to vector<8x16x16xf32>
    %65 = vector.broadcast %63 : vector<8x16x1xf32> to vector<8x16x16xf32>
    %66 = arith.mulf %64, %65 : vector<8x16x16xf32>
    %67 = math.exp %66 : vector<8x16x16xf32>
    %68 = vector.shape_cast %57 : vector<8x16xf32> to vector<8x16x1xf32>
    %69 = vector.shape_cast %59 : vector<16x16xf32> to vector<1x16x16xf32>
    %70 = vector.broadcast %68 : vector<8x16x1xf32> to vector<8x16x16xf32>
    %71 = vector.broadcast %69 : vector<1x16x16xf32> to vector<8x16x16xf32>
    %72 = arith.mulf %70, %71 : vector<8x16x16xf32>
    %73 = vector.shape_cast %50 : vector<8x16xf32> to vector<8x1x16xf32>
    %74 = vector.broadcast %73 : vector<8x1x16xf32> to vector<8x16x16xf32>
    %75 = arith.mulf %72, %74 : vector<8x16x16xf32>
    %cst_25 = arith.constant 1.000000e+00 : f32
    %76 = vector.broadcast %cst_25 : f32 to vector<1x16x16xf32>
    %77 = vector.extract_strided_slice %67 {offsets = [0, 0, 0], sizes = [7, 16, 16], strides = [1, 1, 1]} : vector<8x16x16xf32> to vector<7x16x16xf32>
    %78 = tpu.concatenate %76, %77 in 0 : vector<1x16x16xf32>, vector<7x16x16xf32> -> vector<8x16x16xf32>
    %cst_26 = arith.constant 0.000000e+00 : f32
    %79 = vector.broadcast %cst_26 : f32 to vector<1x16x16xf32>
    %80 = vector.extract_strided_slice %75 {offsets = [0, 0, 0], sizes = [7, 16, 16], strides = [1, 1, 1]} : vector<8x16x16xf32> to vector<7x16x16xf32>
    %81 = tpu.concatenate %79, %80 in 0 : vector<1x16x16xf32>, vector<7x16x16xf32> -> vector<8x16x16xf32>
    %82 = arith.mulf %67, %81 : vector<8x16x16xf32>
    %83 = arith.addf %82, %75 : vector<8x16x16xf32>
    %84 = arith.mulf %67, %78 : vector<8x16x16xf32>
    %cst_27 = arith.constant 1.000000e+00 : f32
    %85 = vector.broadcast %cst_27 : f32 to vector<2x16x16xf32>
    %86 = vector.extract_strided_slice %84 {offsets = [0, 0, 0], sizes = [6, 16, 16], strides = [1, 1, 1]} : vector<8x16x16xf32> to vector<6x16x16xf32>
    %87 = tpu.concatenate %85, %86 in 0 : vector<2x16x16xf32>, vector<6x16x16xf32> -> vector<8x16x16xf32>
    %cst_28 = arith.constant 0.000000e+00 : f32
    %88 = vector.broadcast %cst_28 : f32 to vector<2x16x16xf32>
    %89 = vector.extract_strided_slice %83 {offsets = [0, 0, 0], sizes = [6, 16, 16], strides = [1, 1, 1]} : vector<8x16x16xf32> to vector<6x16x16xf32>
    %90 = tpu.concatenate %88, %89 in 0 : vector<2x16x16xf32>, vector<6x16x16xf32> -> vector<8x16x16xf32>
    %91 = arith.mulf %84, %90 : vector<8x16x16xf32>
    %92 = arith.addf %91, %83 : vector<8x16x16xf32>
    %93 = arith.mulf %84, %87 : vector<8x16x16xf32>
    %cst_29 = arith.constant 1.000000e+00 : f32
    %94 = vector.broadcast %cst_29 : f32 to vector<4x16x16xf32>
    %95 = vector.extract_strided_slice %93 {offsets = [0, 0, 0], sizes = [4, 16, 16], strides = [1, 1, 1]} : vector<8x16x16xf32> to vector<4x16x16xf32>
    %96 = tpu.concatenate %94, %95 in 0 : vector<4x16x16xf32>, vector<4x16x16xf32> -> vector<8x16x16xf32>
    %cst_30 = arith.constant 0.000000e+00 : f32
    %97 = vector.broadcast %cst_30 : f32 to vector<4x16x16xf32>
    %98 = vector.extract_strided_slice %92 {offsets = [0, 0, 0], sizes = [4, 16, 16], strides = [1, 1, 1]} : vector<8x16x16xf32> to vector<4x16x16xf32>
    %99 = tpu.concatenate %97, %98 in 0 : vector<4x16x16xf32>, vector<4x16x16xf32> -> vector<8x16x16xf32>
    %100 = arith.mulf %93, %99 : vector<8x16x16xf32>
    %101 = arith.addf %100, %92 : vector<8x16x16xf32>
    %102 = arith.mulf %93, %96 : vector<8x16x16xf32>
    %103 = vector.shape_cast %61 : vector<16x16xf32> to vector<1x16x16xf32>
    %104 = vector.broadcast %103 : vector<1x16x16xf32> to vector<8x16x16xf32>
    %105 = arith.mulf %102, %104 : vector<8x16x16xf32>
    %106 = arith.addf %101, %105 : vector<8x16x16xf32>
    %107 = vector.shape_cast %60 : vector<16x16xf32> to vector<1x16x16xf32>
    %108 = vector.broadcast %107 : vector<1x16x16xf32> to vector<8x16x16xf32>
    %109 = arith.mulf %108, %106 : vector<8x16x16xf32>
    %cst_31 = arith.constant dense<0.000000e+00> : vector<8x16xf32>
    %110 = vector.multi_reduction <add>, %109, %cst_31 [1] : vector<8x16x16xf32> to vector<8x16xf32>
    %c0_32 = arith.constant 0 : index
    %c0_33 = arith.constant 0 : index
    %111 = vector.load %arg11[%c0_32, %c0_33] : memref<8x16xf32, #tpu.memory_space<vmem>>, vector<8x16xf32>
    tpu.vector_store %arg11[%c0_32, %c0_33], %110 {strides = array<i32>} : memref<8x16xf32, #tpu.memory_space<vmem>>, vector<8x16xf32>,
    %c0_34 = arith.constant 0 : index
    %c0_35 = arith.constant 0 : index
    %112 = vector.load %arg11[%c0_34, %c0_35] : memref<8x16xf32, #tpu.memory_space<vmem>>, vector<8x16xf32>
    %c0_36 = arith.constant 0 : index
    %c0_37 = arith.constant 0 : index
    %113 = vector.load %arg8[%c0_36, %c0_37] : memref<1x16xf32, #tpu.memory_space<vmem>>, vector<1x16xf32>
    %114 = vector.broadcast %113 : vector<1x16xf32> to vector<8x16xf32>
    %115 = arith.mulf %114, %50 : vector<8x16xf32>
    %116 = arith.addf %112, %115 : vector<8x16xf32>
    %117 = arith.truncf %116 : vector<8x16xf32> to vector<8x16xbf16>
    %c0_38 = arith.constant 0 : index
    %c0_39 = arith.constant 0 : index
    %118 = vector.load %arg9[%c0_38, %c0_39] : memref<16x8xbf16, #tpu.memory_space<vmem>>, vector<16x8xbf16>
    %cst_40 = arith.constant dense<0.000000e+00> : vector<8x8xf32>
    %119 = tpu.matmul %117, %118, %cst_40 {dimension_numbers = #tpu.dot_dimension_numbers<[1], [0], [0], [1], [0, 0, 1, 1], [], []>} : vector<8x16xbf16>, vector<16x8xbf16>, vector<8x8xf32> -> vector<8x8xf32>
    %120 = arith.addf %119, %1 : vector<8x8xf32>
    %c0_41 = arith.constant 0 : index
    %c0_42 = arith.constant 0 : index
    %c0_43 = arith.constant 0 : index
    %121 = vector.load %arg10[%c0_41, %c0_42, %c0_43] : memref<1x8x8xf32, #tpu.memory_space<vmem>>, vector<1x8x8xf32>
    %122 = vector.shape_cast %121 : vector<1x8x8xf32> to vector<8x8xf32>
    %123 = vector.shape_cast %120 : vector<8x8xf32> to vector<1x8x8xf32>
    tpu.vector_store %arg10[%c0_41, %c0_42, %c0_43], %123 {strides = array<i32>} : memref<1x8x8xf32, #tpu.memory_space<vmem>>, vector<1x8x8xf32>,
    return
  }
  func.func @transform_0(%arg0: i32) -> (i32, i32, i32) {
    %c0_i32 = arith.constant 0 : i32
    %c0_i32_0 = arith.constant 0 : i32
    %c0_i32_1 = arith.constant 0 : i32
    return %arg0, %c0_i32, %c0_i32_0 : i32, i32, i32
  }
  func.func @transform_1(%arg0: i32) -> (i32, i32) {
    %c0_i32 = arith.constant 0 : i32
    %c0_i32_0 = arith.constant 0 : i32
    %c0_i32_1 = arith.constant 0 : i32
    return %c0_i32, %c0_i32_0 : i32, i32
  }
  func.func @transform_2(%arg0: i32) -> (i32, i32) {
    %c0_i32 = arith.constant 0 : i32
    %c0_i32_0 = arith.constant 0 : i32
    %c0_i32_1 = arith.constant 0 : i32
    return %c0_i32, %c0_i32_0 : i32, i32
  }
  func.func @transform_3(%arg0: i32) -> (i32, i32) {
    %c0_i32 = arith.constant 0 : i32
    %c0_i32_0 = arith.constant 0 : i32
    %c0_i32_1 = arith.constant 0 : i32
    return %c0_i32, %c0_i32_0 : i32, i32
  }
  func.func @transform_4(%arg0: i32) -> (i32, i32) {
    %c0_i32 = arith.constant 0 : i32
    %c0_i32_0 = arith.constant 0 : i32
    %c0_i32_1 = arith.constant 0 : i32
    return %c0_i32, %c0_i32_0 : i32, i32
  }
  func.func @transform_5(%arg0: i32) -> (i32, i32) {
    %c0_i32 = arith.constant 0 : i32
    %c0_i32_0 = arith.constant 0 : i32
    %c0_i32_1 = arith.constant 0 : i32
    return %c0_i32, %c0_i32_0 : i32, i32
  }
  func.func @transform_6(%arg0: i32) -> (i32, i32) {
    %c0_i32 = arith.constant 0 : i32
    %c0_i32_0 = arith.constant 0 : i32
    %c0_i32_1 = arith.constant 0 : i32
    return %c0_i32, %c0_i32_0 : i32, i32
  }
  func.func @transform_7(%arg0: i32) -> (i32, i32) {
    %c0_i32 = arith.constant 0 : i32
    %c0_i32_0 = arith.constant 0 : i32
    %c0_i32_1 = arith.constant 0 : i32
    return %c0_i32, %c0_i32_0 : i32, i32
  }
  func.func @transform_8(%arg0: i32) -> (i32, i32) {
    %c0_i32 = arith.constant 0 : i32
    %c0_i32_0 = arith.constant 0 : i32
    %c0_i32_1 = arith.constant 0 : i32
    return %c0_i32, %c0_i32_0 : i32, i32
  }
  func.func @transform_9(%arg0: i32) -> (i32, i32, i32) {
    %c0_i32 = arith.constant 0 : i32
    %c0_i32_0 = arith.constant 0 : i32
    %c0_i32_1 = arith.constant 0 : i32
    return %arg0, %c0_i32, %c0_i32_0 : i32, i32, i32
  }
}

</mosaic_0001>

<bundles_post_ra>
// kernel: tpu_custom_call.1
= control target key start
LH: loop header
LB: loop body
LE: loop exit
PB: predicated region body
PF: predicated region fallthrough
CT: control target
= control target key end

     0   :  { %s2127_s0 = inlined_call_operand.hbm [shape: f32[2,8,8], index: 0, kind: input, shape index: {}]   ;;  %s2128_s1 = inlined_call_operand.vmem [shape: bf16[8,32], index: 1, kind: input, shape index: {}]   ;;  %s2129_s2 = inlined_call_operand.vmem [shape: f32[4,16], index: 2, kind: input, shape index: {}]   ;;  %s2130_s3 = inlined_call_operand.hbm [shape: f32[16,16], index: 3, kind: input, shape index: {}]   ;;  %s2131_s4 = inlined_call_operand.hbm [shape: f32[16,16], index: 4, kind: input, shape index: {}]   ;;  %s2132_s5 = inlined_call_operand.hbm [shape: f32[16,16], index: 5, kind: input, shape index: {}]   ;;  %s2133_s6 = inlined_call_operand.hbm [shape: f32[16,16], index: 6, kind: input, shape index: {}]   ;;  %s2134_s7 = inlined_call_operand.vmem [shape: f32[1,16], index: 7, kind: input, shape index: {}]   ;;  %s2135_s8 = inlined_call_operand.vmem [shape: bf16[16,8], index: 8, kind: input, shape index: {}]   ;;  %s2136_s9 = inlined_call_operand.hbm [shape: f32[2,8,8], index: 9, kind: output, shape index: {}]  }
   0x1   :  { %2143 = sst [smem:[#allocation22_spill]] %s2130_s3 }
   0x2   :  { %2144 = sst [smem:[#allocation23_spill]] %s2131_s4 }
   0x3   :  { %2145 = sst [smem:[#allocation24_spill]] %s2132_s5 }
   0x4   :  { %2146 = sst [smem:[#allocation25_spill]] %s2133_s6 }
   0x5   :  { %14 = vsyncpa [#allocation4], 0 }
   0x6   :  { %16 = vsyncpa [#allocation4 + $0x1], 0 }
   0x7   :  { %17 = vsyncpa [#allocation7], 0 }
   0x8   :  { %18 = vsyncpa [#allocation10], 0 }
   0x9   :  { %19 = vsyncpa [#allocation5], 0 }
   0xa   :  { %21 = vsyncpa [#allocation5 + $0x1], 0  ;;  %s1646_s30 = smov 0   ;;  %s1648_s10 = smov 0  }
   0xb   :  { %s1650_s11 = smov 0   ;;  %s1652_s12 = smov 0  }
   0xc LB: > { %s2147_s3 = sld [smem:[#allocation22_spill]]  ;;  %s1670_s16 = sadd.s32 4294967295, %s1587_s12   ;;  %s1587_s12 = sphi %s1652_s12, %s2173_s12   ;;  %s1583_s11 = sphi %s1650_s11, %s2172_s11   ;;  %s1579_s10 = sphi %s1648_s10, %s2171_s10   ;;  %s1575_s30 = sphi %s1646_s30, %s2170_s30  }
   0xd   : > { %p1184_p0 = scmp.ge.s32.totalorder %s1587_s12, 1  ;;  %p48_p1 = scmp.eq.s32.totalorder %s1670_s16, 0 }
   0xe   : > { %p252_p2 = scmp.lt.s32.totalorder %s1587_s12, 3  ;;  %s1589_s18 = smov [#allocation6]  }
   0xf   : > { %s271_s19 = sshll.u32 %s1589_s18, 4  ;;  %s2149_s5 = sld [smem:[#allocation24_spill]]  ;;  %s272_s19 = int_to_ptr.vmem [resolvable:$true] %s271_s19 }
  0x10   : > { %p1675_p3 = pnand %p1184_p0, %p252_p2  ;;  %s2151_s4 = sld [smem:[#allocation23_spill]] }
  0x11   : > { %s1590_s27 = smov [#allocation9]   ;;  %s1591_s29 = smov 128  }
  0x12   : > { %s269_s15 = sshll.u32 %s2147_s3, 4  ;;  %p1234_p4 = pneg %p1675_p3  ;;  %s270_s15 = int_to_ptr.hbm [resolvable:$true] %s269_s15 }
  0x13   : > { %s299_s28 = sshll.u32 %s1590_s27, 4  ;;  %s1592_s13 = smov 8   ;;  %s300_s28 = int_to_ptr.vmem [resolvable:$true] %s299_s28 }
  0x14   : > { %p1687_p6 = pnand %p1234_p4, %p48_p1  ;;  %s2152_s6 = sld [smem:[#allocation25_spill]] }
  0x15   : > { %s297_s22 = sshll.u32 %s2149_s5, 4  ;;  %s1593_s21 = smov [#allocation8]   ;;  %s298_s22 = int_to_ptr.hbm [resolvable:$true] %s297_s22 }
  0x16   : > { %s283_s26 = sshll.u32 %s2151_s4, 4  ;;  %s285_s24 = sshll.u32 %s1593_s21, 4  ;;  %s284_s26 = int_to_ptr.hbm [resolvable:$true] %s283_s26  ;;  %s286_s24 = int_to_ptr.vmem [resolvable:$true] %s285_s24 }
  0x17   : > { %1237 = dma.hbm_to_vmem [thread:$0]  (!%p1687_p6), %s270_s15, 256, %s272_s19, [#allocation7], %s1591_s29, %s1591_s29, %s1592_s13  }
  0x18   : > { %1243 = dma.hbm_to_vmem [thread:$0]  (!%p1687_p6), %s298_s22, 256, %s300_s28, [#allocation10], %s1591_s29, %s1591_s29, %s1592_s13  }
  0x19   : > { %1240 = dma.hbm_to_vmem [thread:$0]  (!%p1687_p6), %s284_s26, 256, %s286_s24, [#allocation7], %s1591_s29, %s1591_s29, %s1592_s13  }
  0x1a   : > { %s311_s20 = sshll.u32 %s2152_s6, 4  ;;  %s1594_s15 = smov [#allocation11]   ;;  %s312_s20 = int_to_ptr.hbm [resolvable:$true] %s311_s20 }
  0x1b   : > { %s313_s19 = sshll.u32 %s1594_s15, 4  ;;  %s1183_s22 = sadd.s32 4294967294, %s1587_s12   ;;  %s314_s19 = int_to_ptr.vmem [resolvable:$true] %s313_s19 }
  0x1c   : > { %1246 = dma.hbm_to_vmem [thread:$0]  (!%p1687_p6), %s312_s20, 256, %s314_s19, [#allocation10], %s1591_s29, %s1591_s29, %s1592_s13  }
  0x1d   : > { %s1707_s25 = sadd.s32 1, %s1587_s12   ;;  %s34_s28 = sadd.s32 1, %s1583_s11 }
  0x1e   : > { %s31_s27 = ssub.s32 %s1587_s12, %s1707_s25  ;;  %p41_p8 = scmp.ne.s32.totalorder %s1583_s11, %s1579_s10 }
  0x1f   : > { %p32_p7 = scmp.eq.s32.totalorder %s31_s27, 0  ;;  %p42_p9 = scmp.eq.s32.totalorder %s1587_s12, 0 }
  0x20   : > { %p47_p10 = scmp.ne.s32.totalorder %s1579_s10, %s1575_s30  ;;  %p239_p13 = scmp.eq.s32.totalorder %s1670_s16, 1 }
  0x21   : > { %s1718_s26 = scalar_select %p32_p7, %s1583_s11, %s34_s28  }
  0x22   : > { %p1720_p11 = por %p42_p9, %p41_p8  ;;  %p1726_p12 = por %p48_p1, %p47_p10 }
  0x23   : > { %p245_p0 = scmp.eq.s32.totalorder %s1183_s22, 1  ;;  %p1259_p2 = scmp.lt.s32.totalorder %s1587_s12, 2 }
  0x24   : > { %s333_s29 = sand.u32 1, %s1583_s11   ;;  %p1733_p4 = por %p239_p13, %p41_p8 }
  0x25   : > { %p1737_p6 = por %p245_p0, %p47_p10  ;;  %s1190_s20 = sshll.u32 %s333_s29, 3 }
  0x26   : > { %s1191_s21 = sshll.u32 %s1587_s12, 3  ;;  %s337_s27 = scalar_lea.vmem [#allocation3], %s1190_s20 }
  0x27   : > { %s341_s19 = scalar_lea.hbm %s2127_s0, %s1191_s21  ;;  %s345_s28 = sshll.u32 %s337_s27, 4  ;;  %s346_s28 = int_to_ptr.vmem [resolvable:$true] %s345_s28 }
  0x28   : > { %s343_s3 = sshll.u32 %s341_s19, 4  ;;  %p1747_p7 = pnand %p1259_p2, %p1720_p11  ;;  %s344_s3 = int_to_ptr.hbm [resolvable:$true] %s343_s3 }
  0x29   : > { %s334_s4 = scalar_lea.sflag [#allocation4], %s333_s29  ;;  %s1483_s5 = sshra.s32 %s344_s3, 4  ;;  %s1484_s5 = int_to_ptr.hbm [resolvable:$true] %s1483_s5 }
  0x2a   : > { %s1485_s6 = scalar_lea.hbm %s1484_s5, 8  ;;  %p1487_p9 = pneg %p1747_p7 }
  0x2b   : > { %p1486_p8 = scmp.ne.s32.totalorder %s1484_s5, %s1485_s6  ;;  %s1490_s24 = scalar_lea.hbm %s2127_s0, 16 }
  0x2c   : > { %p1491_p11 = scmp.lt.s32.totalorder %s1484_s5, %s2127_s0  ;;  %p1492_p0 = scmp.lt.s32.totalorder %s1490_s24, %s1485_s6 }
  0x2d   : > { %p1488_p10 = pnand %p1487_p9, %p1486_p8 }
  0x2e   : > { %p1493_p2 = por %p1492_p0, %p1491_p11 }
  0x2f   : > { %p1489_p13 = pneg %p1488_p10 }
  0x31   : > { %p1494_p5 = pnand %p1493_p2, %p1489_p13 }
  0x33   : > { %1497 = shalt.err (!%p1494_p5)
}
  0x34   : > { %1250 = dma.hbm_to_vmem [thread:$0]  (!%p1747_p7), %s344_s3, 128, %s346_s28, %s334_s4  }
  0x35   : > { %354 = sbr.rel (%p1675_p3) target bundleno = 925 (0x39d), region = 56 }
  0x3a   : > { %s1764_s29 = sand.u32 1, %s1579_s10  }
  0x3b   : > { %s1193_s19 = sshll.u32 %s1764_s29, 3  ;;  %s357_s27 = scalar_lea.sflag [#allocation4], %s1764_s29 }
  0x3c   : > { %s1770_s5 = scalar_lea.vmem [#allocation3], %s1193_s19 }
  0x3d   : > { %1558 = dma.done.wait (%p1726_p12), %s357_s27, 128  }
  0x3e   : > { %1560 = vsyncadd (%p1726_p12), %s357_s27, 4294967168 }
  0x3f   : > { %1562 = dma.done.wait (%p48_p1), [#allocation7], 512  }
  0x40   : > { %1564 = vsyncadd (%p48_p1), [#allocation7], 4294966784 }
  0x41   : > { %1566 = dma.done.wait (%p48_p1), [#allocation10], 512  }
  0x42   : > { %1568 = vsyncadd (%p48_p1), [#allocation10], 4294966784  ;;  %vm424_vm0 = vcmask 1043456   ;;  %v419_v0 = vld [vmem:[%s2128_s1] sm:$0xf]  ;;  %v417_v1 = vld [vmem:[%s1770_s5] sm:$0xff]  ;;  %v468_v4 = vlaneseq }
  0x43   : > { %v426_v2 = vsel %vm424_vm0, %v419_v0, 0  ;;  %v418_v3 = vpack.c.bf16 %v417_v1, %v417_v1  ;;  %vm420_vm1 = vcmask 64512   ;;  %s1595_s6 = smov 112   ;;  %v465_v21 = vld [vmem:[%s2129_s2] sm:$0xf]  ;;  %v509_v38 = vld [vmem:[#allocation8 + $0x8] sm:$0xff] }
  0x44   : > { %435 = vmatpush.bf16.msra.mxu0 %v426_v2  ;;  %v1789_v5 = vshrl.u32 %v468_v4, 7  ;;  %v466_v24 = vperm.slane %v465_v21, 3  ;;  %v473_v25 = vperm.slane %v465_v21, 2  ;;  %v479_v29 = vperm.slane %v465_v21, 1  ;;  %528 = vmatpush.msra.mxu1 %v509_v38  ;;  %v508_v41 = vld [vmem:[#allocation8] sm:$0xff]  ;;  %s1210_s24 = sshll.u32 %s1670_s16, 3 }
  0x45   : > { %v485_v32 = vperm.slane %v465_v21, 0  ;;  %vm510_vm13 = vcmask 130048   ;;  %v1810_v21 = vld [vmem:[#allocation6] sm:$0xff]  ;;  %s1070_s27 = scalar_lea.hbm %s2136_s9, %s1210_s24  ;;  %s415_s3 = scalar_lea.vmem [#allocation12], %s1193_s19 }
  0x46   : > { %1304 = vset.pattern.permute.xlu0 %v1789_v5  ;;  %vm470_vm6 = vcmp.ge.s32.totalorder %v1789_v5, 1  ;;  %vm476_vm7 = vcmp.ge.s32.totalorder %v1789_v5, 2  ;;  %vm482_vm8 = vcmp.ge.s32.totalorder %v1789_v5, 3  ;;  %529 = vmatpush.msra.mxu1 %v508_v41  ;;  %v568_v57 = vadd.s32 8, %v1789_v5  ;;  %s1072_s4 = sshll.u32 %s415_s3, 4  ;;  %s1060_s17 = scalar_lea.sflag [#allocation5], %s1764_s29  ;;  %s1073_s4 = int_to_ptr.vmem [resolvable:$true] %s1072_s4 }
  0x47   : > { %1199 = vmatmul.msk.bf16.vlgmr.msra.gmra.mxu0 %vm420_vm1, %v418_v3  ;;  %s1533_s19 = scalar_lea.hbm %s2136_s9, 16 }
  0x48   : > { %1307 = vset.pattern.permute.xlu2 %v568_v57  ;;  %1305 = vset.pattern.permute.xlu1 %v568_v57 }
  0xc4   : > { %v437_v6 = vpop.f32.mrf.mxu0 }
  0xc5   : > { %v1200_v7 = vmul.f32 -1.442695, %v437_v6 }
  0xc7   : > { %1318 = vpow2.f32 %v1200_v7 }
  0xcc   : > { %v439_v8 = vpop.f32.mrf.mxu0 }
  0xcd   : > { %v1319_v9 = vpop.eup %1318 }
  0xce   : > { %v444_v10 = vadd.f32 1.0, %v1319_v9 }
  0xd0   : > { %1320 = vrcp.f32 %v444_v10  ;;  %v456_v14 = vand.u32 2147483648, %v444_v10  ;;  %v454_v16 = vand.u32 2147483647, %v444_v10  ;;  %vm450_vm3 = vweird.f32 %v444_v10 }
  0xd2   : > { %v457_v18 = vor.u32 1.1754944e-38, %v456_v14  ;;  %vm455_vm5 = vcmp.eq.f32.partialorder %v454_v16, 8.507059e+37 }
  0xd6   : > { %v1321_v11 = vpop.eup %1320 }
  0xd7   : > { %v446_v12 = vmul.f32 %v1321_v11, %v444_v10  ;;  %vm451_vm2 = vweird.f32 %v1321_v11 }
  0xd8   : > { %vm452_vm4 = vmor %vm450_vm3, %vm451_vm2  ;;  %vm1010_vm3 = vcmask 1041409  }
  0xd9   : > { %v447_v13 = vsub.f32 1.0, %v446_v12 }
  0xdb   : > { %v448_v15 = vmul.f32 %v1321_v11, %v447_v13 }
  0xdd   : > { %v449_v17 = vadd.f32 %v1321_v11, %v448_v15 }
  0xdf   : > { %v453_v19 = vsel %vm452_vm4, %v1321_v11, %v449_v17  ;;  %vm1012_vm4 = vcmask 1042434  }
  0xe0   : > { %v458_v20 = vsel %vm455_vm5, %v457_v18, %v453_v19  ;;  %vm1014_vm5 = vcmask 1043459  }
  0xe1   : > { %461 = vrot.lane.b32.xlu0 %v458_v20, %s1595_s6  ;;  %v1808_v20 = vld [vmem:[#allocation6 + $0x8] sm:$0xff]  ;;  %s1074_s6 = sshll.u32 %s1070_s27, 4  ;;  %s1075_s6 = int_to_ptr.hbm [resolvable:$true] %s1074_s6 }
  0xe2   : > { %s1527_s23 = sshra.s32 %s1075_s6, 4  ;;  %s1528_s23 = int_to_ptr.hbm [resolvable:$true] %s1527_s23 }
  0xe3   : > { %s1529_s16 = scalar_lea.hbm %s1528_s23, 8  ;;  %p1534_p12 = scmp.lt.s32.totalorder %s1528_s23, %s2136_s9 }
  0xe4   : > { %p1530_p1 = scmp.ne.s32.totalorder %s1528_s23, %s1529_s16  ;;  %p1535_p7 = scmp.lt.s32.totalorder %s1533_s19, %s1529_s16 }
  0xe6   : > { %p1531_p3 = pnand %p1530_p1, %p1733_p4  ;;  %p1536_p8 = por %p1535_p7, %p1534_p12 }
  0xe8   : > { %p1532_p5 = pneg %p1531_p3 }
  0xea   : > { %p1537_p9 = pnand %p1536_p8, %p1532_p5 }
 0x153   : > { %v462_v22 = vpop.permute.xlu0 %461 }
 0x154   : > { %v464_v23 = vmul.f32 %v462_v22, %v437_v6 }
 0x156   : > { %v471_v26 = vrot.slane %v464_v23, 7  ;;  %v477_v27 = vrot.slane %v464_v23, 6  ;;  %v483_v28 = vrot.slane %v464_v23, 5  ;;  %v467_v33 = vmul.f32 %v466_v24, %v464_v23 }
 0x158   : > { %v472_v30 = vsel %vm470_vm6, %v471_v26, 0.0  ;;  %v478_v31 = vsel %vm476_vm7, %v477_v27, 0.0  ;;  %v484_v35 = vsel %vm482_vm8, %v483_v28, 0.0  ;;  %vm1016_vm6 = vcmask 1044484  }
 0x159   : > { %v474_v34 = vmul.f32 %v473_v25, %v472_v30  ;;  %v480_v37 = vmul.f32 %v479_v29, %v478_v31  ;;  %v486_v40 = vmul.f32 %v485_v32, %v484_v35  ;;  %v1819_v30 = vld [vmem:[#allocation9 + $0x8] sm:$0xff]  ;;  %v1821_v31 = vld [vmem:[#allocation9] sm:$0xff]  ;;  %vm1018_vm7 = vcmask 1045509  }
 0x15a   : > { %vm1020_vm8 = vcmask 1046534  }
 0x15b   : > { %v475_v36 = vadd.f32 %v474_v34, %v467_v33 }
 0x15d   : > { %v481_v39 = vadd.f32 %v480_v37, %v475_v36 }
 0x15f   : > { %v487_v42 = vadd.f32 %v486_v40, %v481_v39 }
 0x161   : > { %v1201_v43 = vmul.f32 -1.442695, %v487_v42 }
 0x163   : > { %1322 = vpow2.f32 %v1201_v43 }
 0x169   : > { %v1323_v44 = vpop.eup %1322 }
 0x16a   : > { %v491_v45 = vadd.f32 1.0, %v1323_v44 }
 0x16c   : > { %1324 = vrcp.f32 %v491_v45  ;;  %v503_v49 = vand.u32 2147483648, %v491_v45  ;;  %v501_v51 = vand.u32 2147483647, %v491_v45  ;;  %vm497_vm10 = vweird.f32 %v491_v45 }
 0x16e   : > { %v504_v53 = vor.u32 1.1754944e-38, %v503_v49  ;;  %vm502_vm12 = vcmp.eq.f32.partialorder %v501_v51, 8.507059e+37 }
 0x172   : > { %v1325_v46 = vpop.eup %1324 }
 0x173   : > { %v493_v47 = vmul.f32 %v1325_v46, %v491_v45  ;;  %vm498_vm9 = vweird.f32 %v1325_v46 }
 0x174   : > { %vm499_vm11 = vmor %vm497_vm10, %vm498_vm9  ;;  %vm1022_vm9 = vcmask 1047559  }
 0x175   : > { %v494_v48 = vsub.f32 1.0, %v493_v47 }
 0x177   : > { %v495_v50 = vmul.f32 %v1325_v46, %v494_v48 }
 0x179   : > { %v496_v52 = vadd.f32 %v1325_v46, %v495_v50 }
 0x17b   : > { %v500_v54 = vsel %vm499_vm11, %v1325_v46, %v496_v52 }
 0x17c   : > { %v505_v55 = vsel %vm502_vm12, %v504_v53, %v500_v54 }
 0x17d   : > { %v1798_v56 = vmul.f32 %v505_v55, %v487_v42 }
 0x17f   : > { %2158 = vst [vmem:[#allocation17_spill] sm:$0xff] %v1798_v56  ;;  %1202 = vmatmul.msk.f32.vlgmr.msra.gmra.mxu1 %vm510_vm13, %v1798_v56  ;;  %v734_v36 = vperm.slane %v1798_v56, 0  ;;  %v727_v42 = vrot.slane %v1798_v56, 1 }
 0x181   : > { %v735_v52 = vperm.slane %v727_v42, 0 }
 0x1fc   : > { %v531_v58 = vpop.f32.mrf.mxu1 }
 0x1fd   : > { %v1203_v59 = vmul.f32 -1.442695, %v531_v58 }
 0x1ff   : > { %1326 = vpow2.f32 %v1203_v59 }
 0x205   : > { %v1327_v60 = vpop.eup %1326 }
 0x206   : > { %v537_v61 = vadd.f32 1.0, %v1327_v60 }
 0x208   : > { %1328 = vrcp.f32 %v537_v61  ;;  %v549_v1 = vand.u32 2147483648, %v537_v61  ;;  %v547_v3 = vand.u32 2147483647, %v537_v61  ;;  %vm543_vm15 = vweird.f32 %v537_v61 }
 0x20a   : > { %v550_v6 = vor.u32 1.1754944e-38, %v549_v1  ;;  %vm548_vm2 = vcmp.eq.f32.partialorder %v547_v3, 8.507059e+37 }
 0x20e   : > { %v1329_v62 = vpop.eup %1328 }
 0x20f   : > { %v539_v63 = vmul.f32 %v1329_v62, %v537_v61  ;;  %vm544_vm14 = vweird.f32 %v1329_v62 }
 0x210   : > { %vm545_vm0 = vmor %vm543_vm15, %vm544_vm14 }
 0x211   : > { %v540_v0 = vsub.f32 1.0, %v539_v63 }
 0x213   : > { %v541_v2 = vmul.f32 %v1329_v62, %v540_v0 }
 0x215   : > { %v542_v4 = vadd.f32 %v1329_v62, %v541_v2  ;;  %v728_v2 = vrot.slane %v1798_v56, 2 }
 0x217   : > { %v546_v7 = vsel %vm545_vm0, %v1329_v62, %v542_v4  ;;  %v729_v4 = vrot.slane %v1798_v56, 3 }
 0x218   : > { %v551_v8 = vsel %vm548_vm2, %v550_v6, %v546_v7 }
 0x219   : > { %v572_v9 = vperm.slane %v551_v8, 1  ;;  %v559_v10 = vperm.slane %v551_v8, 0  ;;  %v585_v11 = vperm.slane %v551_v8, 2  ;;  %v598_v12 = vperm.slane %v551_v8, 3 }
 0x21a   : > { %v637_v13 = vperm.slane %v551_v8, 6  ;;  %v611_v14 = vperm.slane %v551_v8, 4  ;;  %v624_v15 = vperm.slane %v551_v8, 5  ;;  %v650_v16 = vperm.slane %v551_v8, 7 }
 0x21b   : > { %583 = vperm.xlu2 %1307, %v572_v9   ;;  %570 = vperm.xlu1 %1305, %v559_v10  }
 0x21c   : > { %564 = vperm.xlu0 %1304, %v559_v10  }
 0x223   : > { %1308 = vset.pattern.permute.xlu2 %v1789_v5  ;;  %1306 = vset.pattern.permute.xlu1 %v1789_v5 }
 0x224   : > { %1310 = vset.pattern.permute.xlu0 %v568_v57 }
 0x22b   : > { %590 = vperm.xlu2 %1308, %v585_v11   ;;  %577 = vperm.xlu1 %1306, %v572_v9  }
 0x22c   : > { %609 = vperm.xlu0 %1310, %v598_v12  }
 0x233   : > { %603 = vperm.xlu2 %1308, %v598_v12   ;;  %1309 = vset.pattern.permute.xlu1 %v568_v57 }
 0x234   : > { %1313 = vset.pattern.permute.xlu0 %v1789_v5 }
 0x23b   : > { %1312 = vset.pattern.permute.xlu2 %v568_v57  ;;  %596 = vperm.xlu1 %1309, %v585_v11  }
 0x23c   : > { %642 = vperm.xlu0 %1313, %v637_v13  }
 0x243   : > { %622 = vperm.xlu2 %1312, %v611_v14   ;;  %1311 = vset.pattern.permute.xlu1 %v1789_v5 }
 0x244   : > { %1316 = vset.pattern.permute.xlu0 %v568_v57 }
 0x24b   : > { %635 = vperm.xlu2 %1312, %v624_v15   ;;  %616 = vperm.xlu1 %1311, %v611_v14   ;;  %v730_v14 = vrot.slane %v1798_v56, 4 }
 0x253   : > { %1315 = vset.pattern.permute.xlu2 %v1789_v5  ;;  %629 = vperm.xlu1 %1311, %v624_v15  }
 0x25b   : > { %655 = vperm.xlu2 %1315, %v650_v16   ;;  %1314 = vset.pattern.permute.xlu1 %v568_v57 }
 0x263   : > { %648 = vperm.xlu1 %1314, %v637_v13  }
 0x26b   : > { %661 = vperm.xlu1 %1314, %v650_v16   ;;  %v736_v16 = vperm.slane %v728_v2, 0 }
 0x275   : > { %v584_v17 = vpop.permute.xlu2 %583 }
 0x276   : > { %v666_v26 = vmul.f32 %v584_v17, %v1808_v20  ;;  %v714_v48 = vmul.f32 %v584_v17, %v1819_v30 }
 0x278   : > { %v685_v27 = vmul.f32 1.442695, %v666_v26  ;;  %v1852_v58 = vmul.f32 %v735_v52, %v714_v48 }
 0x285   : > { %v591_v25 = vpop.permute.xlu2 %590 }
 0x286   : > { %v667_v46 = vmul.f32 %v591_v25, %v1810_v21  ;;  %v715_v17 = vmul.f32 %v591_v25, %v1821_v31 }
 0x288   : > { %v687_v57 = vmul.f32 1.442695, %v667_v46 }
 0x28d   : > { %v571_v18 = vpop.permute.xlu1 %570  ;;  %v604_v32 = vpop.permute.xlu2 %603 }
 0x28e   : > { %v565_v19 = vpop.permute.xlu0 %564  ;;  %v664_v22 = vmul.f32 %v571_v18, %v1808_v20  ;;  %v712_v33 = vmul.f32 %v571_v18, %v1819_v30  ;;  %v669_v49 = vmul.f32 %v604_v32, %v1810_v21  ;;  %v717_v18 = vmul.f32 %v604_v32, %v1821_v31 }
 0x28f   : > { %v663_v23 = vmul.f32 %v565_v19, %v1810_v21  ;;  %v711_v34 = vmul.f32 %v565_v19, %v1821_v31  ;;  %v1873_v19 = vld [vmem:[#allocation11 + $0x8] sm:$0xff] }
 0x290   : > { %v681_v24 = vmul.f32 1.442695, %v664_v22  ;;  %v751_v39 = vmul.f32 %v734_v36, %v712_v33  ;;  %v691_v59 = vmul.f32 1.442695, %v669_v49  ;;  %v1875_v22 = vld [vmem:[#allocation11] sm:$0xff] }
 0x291   : > { %v679_v5 = vmul.f32 1.442695, %v663_v23  ;;  %v750_v40 = vmul.f32 %v734_v36, %v711_v34  ;;  %v731_v23 = vrot.slane %v1798_v56, 5 }
 0x292   : > { %1330 = vpow2.f32 %v681_v24  ;;  %v737_v24 = vperm.slane %v729_v4, 0 }
 0x293   : > { %1332 = vpow2.f32 %v679_v5 }
 0x294   : > { %1334 = vpow2.f32 %v685_v27  ;;  %v1888_v42 = vmul.f32 %v737_v24, %v717_v18  ;;  %v1921_v18 = vperm.slane %v731_v23, 0 }
 0x298   : > { %v1815_v28 = vpop.eup %1330 }
 0x299   : > { %v1817_v29 = vpop.eup %1332  ;;  %v767_v37 = vmul.f32 0.0, %v1815_v28 }
 0x29a   : > { %v766_v38 = vmul.f32 0.0, %v1817_v29  ;;  %v1834_v45 = vpop.eup %1334 }
 0x29b   : > { %v1830_v43 = vadd.f32 %v767_v37, %v751_v39  ;;  %v1843_v50 = vmul.f32 %v1834_v45, %v1815_v28  ;;  %v769_v53 = vmul.f32 %v1834_v45, %v751_v39  ;;  %v732_v39 = vrot.slane %v1798_v56, 6 }
 0x29c   : > { %v1832_v44 = vadd.f32 %v766_v38, %v750_v40 }
 0x29d   : > { %v578_v35 = vpop.permute.xlu1 %577  ;;  %v1837_v47 = vpop.permute.xlu2 %622  ;;  %v1847_v54 = vadd.f32 %v1830_v43, %v767_v37  ;;  %v813_v60 = vmul.f32 0.0, %v1843_v50  ;;  %v1858_v62 = vadd.f32 %v769_v53, %v1852_v58 }
 0x29e   : > { %v665_v41 = vmul.f32 %v578_v35, %v1810_v21  ;;  %v1850_v55 = vadd.f32 %v1832_v44, %v766_v38  ;;  %v672_v61 = vmul.f32 %v1837_v47, %v1808_v20  ;;  %v610_v3 = vpop.permute.xlu0 %609  ;;  %v713_v7 = vmul.f32 %v578_v35, %v1821_v31 }
 0x29f   : > { %v867_v63 = vadd.f32 %v1847_v54, %v767_v37  ;;  %v1865_v6 = vadd.f32 %v813_v60, %v1858_v62  ;;  %v670_v15 = vmul.f32 %v610_v3, %v1808_v20 }
 0x2a0   : > { %v683_v51 = vmul.f32 1.442695, %v665_v41  ;;  %v866_v0 = vadd.f32 %v1850_v55, %v766_v38  ;;  %v697_v8 = vmul.f32 1.442695, %v672_v61  ;;  %v752_v26 = vmul.f32 %v735_v52, %v713_v7 }
 0x2a1   : > { %v899_v12 = vadd.f32 %v867_v63, %v767_v37  ;;  %v869_v5 = vadd.f32 %v1865_v6, %v813_v60  ;;  %v754_v41 = vmul.f32 %v736_v16, %v715_v17 }
 0x2a2   : > { %1336 = vpow2.f32 %v683_v51  ;;  %v898_v13 = vadd.f32 %v866_v0, %v766_v38  ;;  %v693_v38 = vmul.f32 1.442695, %v670_v15  ;;  %v718_v51 = vmul.f32 %v610_v3, %v1819_v30 }
 0x2a3   : > { %1338 = vpow2.f32 %v687_v57  ;;  %v915_v36 = vmul.f32 %v899_v12, %v1873_v19  ;;  %v901_v48 = vadd.f32 %v869_v5, %v813_v60  ;;  %v720_v60 = vmul.f32 %v1837_v47, %v1819_v30 }
 0x2a4   : > { %1340 = vpow2.f32 %v691_v59  ;;  %v914_v37 = vmul.f32 %v898_v13, %v1875_v22 }
 0x2a5   : > { %v636_v9 = vpop.permute.xlu2 %635  ;;  %1342 = vpow2.f32 %v697_v8  ;;  %v931_v61 = vsel %vm510_vm13, %v915_v36, 0.0 }
 0x2a6   : > { %v674_v27 = vmul.f32 %v636_v9, %v1808_v20  ;;  %v930_v63 = vsel %vm510_vm13, %v914_v37, 0.0  ;;  %v722_v15 = vmul.f32 %v636_v9, %v1819_v30 }
 0x2a7   : > { %v1913_v12 = vadd.f32 %v931_v61, %v930_v63 }
 0x2a8   : > { %v1337_v11 = vpop.eup %1336  ;;  %v701_v52 = vmul.f32 1.442695, %v674_v27 }
 0x2a9   : > { %v1339_v33 = vpop.eup %1338  ;;  %v768_v34 = vmul.f32 %v1337_v11, %v750_v40  ;;  %v1881_v35 = vmul.f32 %v1337_v11, %v1817_v29  ;;  %v733_v40 = vrot.slane %v1798_v56, 7  ;;  %2159 = vst [vmem:[#allocation18_spill] sm:$0xff] %v1913_v12 }
 0x2aa   : > { %v1883_v32 = vpop.eup %1340  ;;  %v1890_v46 = vmul.f32 %v1339_v33, %v1337_v11  ;;  %v770_v49 = vmul.f32 %v1339_v33, %v752_v26 }
 0x2ab   : > { %v772_v53 = vmul.f32 %v1883_v32, %v754_v41  ;;  %v784_v57 = vadd.f32 %v768_v34, %v752_v26  ;;  %v812_v59 = vmul.f32 0.0, %v1881_v35  ;;  %v1343_v2 = vpop.eup %1342  ;;  %v1902_v3 = vmul.f32 %v1883_v32, %v1339_v33 }
 0x2ac   : > { %v814_v4 = vmul.f32 %v1890_v46, %v1832_v44  ;;  %v1908_v7 = vmul.f32 %v1817_v29, %v1890_v46  ;;  %v1911_v11 = vadd.f32 %v770_v49, %v754_v41  ;;  %v1919_v44 = vperm.slane %v730_v14, 0 }
 0x2ad   : > { %v597_v1 = vpop.permute.xlu1 %596  ;;  %v816_v47 = vmul.f32 %v1902_v3, %v784_v57  ;;  %v1916_v13 = vadd.f32 %v812_v59, %v784_v57  ;;  %v1924_v27 = vadd.f32 %v772_v53, %v1888_v42  ;;  %v1931_v33 = vmul.f32 %v1902_v3, %v1881_v35 }
 0x2ae   : > { %v668_v10 = vmul.f32 %v597_v1, %v1808_v20  ;;  %v716_v0 = vmul.f32 %v597_v1, %v1819_v30  ;;  %v757_v1 = vmul.f32 %v737_v24, %v718_v51  ;;  %v1927_v24 = vadd.f32 %v814_v4, %v1911_v11 }
 0x2af   : > { %2160 = vst [vmem:[#allocation19_spill] sm:$0xff] %v1931_v33  ;;  %v854_v34 = vmul.f32 0.0, %v1908_v7  ;;  %v759_v14 = vmul.f32 %v1919_v44, %v720_v60  ;;  %v1944_v37 = vadd.f32 %v816_v47, %v1924_v27  ;;  %v1948_v41 = vmul.f32 %v1921_v18, %v722_v15 }
 0x2b0   : > { %v689_v25 = vmul.f32 1.442695, %v668_v10  ;;  %v917_v10 = vmul.f32 %v901_v48, %v1873_v19  ;;  %v775_v17 = vmul.f32 %v1343_v2, %v757_v1  ;;  %v755_v5 = vmul.f32 %v736_v16, %v716_v0  ;;  %v643_v48 = vpop.permute.xlu0 %642 }
 0x2b1   : > { %v1938_v16 = vperm.slane %v732_v39, 0  ;;  %2161 = vst [vmem:[#allocation20_spill] sm:$0xff] %v1944_v37  ;;  %v856_v53 = vmul.f32 0.0, %v1931_v33  ;;  %v870_v57 = vadd.f32 %v854_v34, %v1927_v24  ;;  %v1965_v47 = vmul.f32 %v643_v48, %v1821_v31 }
 0x2b2   : > { %1344 = vpow2.f32 %v689_v25  ;;  %v1936_v23 = vsel %vm510_vm13, %v917_v10, 0.0  ;;  %v1940_v25 = vperm.slane %v733_v40, 0  ;;  %v1952_v51 = vadd.f32 %v775_v17, %v759_v14 }
 0x2b3   : > { %1346 = vpow2.f32 %v693_v38  ;;  %v868_v38 = vadd.f32 %v1916_v13, %v812_v59  ;;  %v675_v10 = vmul.f32 %v643_v48, %v1810_v21  ;;  %v872_v15 = vadd.f32 %v856_v53, %v1944_v37 }
 0x2b4   : > { %1348 = vpow2.f32 %v701_v52 }
 0x2b5   : > { %v1961_v0 = vpop.permute.xlu2 %655  ;;  %v900_v17 = vadd.f32 %v868_v38, %v812_v59 }
 0x2b6   : > { %v677_v33 = vmul.f32 %v1961_v0, %v1810_v21 }
 0x2b8   : > { %v1345_v26 = vpop.eup %1344 }
 0x2b9   : > { %v1347_v9 = vpop.eup %1346  ;;  %v771_v39 = vmul.f32 %v1345_v26, %v1852_v58  ;;  %v801_v61 = vmul.f32 %v1345_v26, %v1834_v45 }
 0x2ba   : > { %v1950_v49 = vpop.eup %1348  ;;  %v773_v52 = vmul.f32 %v1347_v9, %v755_v5  ;;  %v1959_v63 = vmul.f32 %v1347_v9, %v1343_v2  ;;  %v803_v4 = vmul.f32 %v1347_v9, %v1345_v26  ;;  %v902_v26 = vadd.f32 %v870_v57, %v854_v34 }
 0x2bb   : > { %v777_v36 = vmul.f32 %v1950_v49, %v759_v14  ;;  %v787_v45 = vadd.f32 %v771_v39, %v755_v5  ;;  %v815_v9 = vmul.f32 %v801_v61, %v1830_v43  ;;  %v1974_v48 = vmul.f32 %v1815_v28, %v801_v61 }
 0x2bc   : > { %v789_v12 = vadd.f32 %v773_v52, %v757_v1  ;;  %v1977_v37 = vmul.f32 %v1950_v49, %v1343_v2  ;;  %v817_v59 = vmul.f32 %v803_v4, %v1858_v62  ;;  %v1981_v14 = vmul.f32 %v803_v4, %v1843_v50 }
 0x2bd   : > { %v617_v8 = vpop.permute.xlu1 %616  ;;  %v703_v1 = vmul.f32 1.442695, %v675_v10  ;;  %v904_v5 = vadd.f32 %v872_v15, %v856_v53  ;;  %v819_v43 = vmul.f32 %v1959_v63, %v787_v45  ;;  %v707_v2 = vmul.f32 1.442695, %v677_v33 }
 0x2be   : > { %v671_v40 = vmul.f32 %v617_v8, %v1810_v21  ;;  %2162 = vst [vmem:[#allocation21_spill] sm:$0xff] %v1981_v14  ;;  %v719_v34 = vmul.f32 %v617_v8, %v1821_v31  ;;  %v821_v38 = vmul.f32 %v1977_v37, %v789_v12  ;;  %v1989_v39 = vmul.f32 %v902_v26, %v1875_v22 }
 0x2bf   : > { %v1992_v62 = vadd.f32 %v777_v36, %v1948_v41  ;;  %v1994_v52 = vadd.f32 %v815_v9, %v787_v45  ;;  %v855_v53 = vmul.f32 0.0, %v1974_v48  ;;  %v1997_v8 = vadd.f32 %v817_v59, %v789_v12 }
 0x2c0   : > { %v695_v58 = vmul.f32 1.442695, %v671_v40  ;;  %v857_v10 = vmul.f32 0.0, %v1981_v14  ;;  %v847_v33 = vmul.f32 %v1959_v63, %v801_v61 }
 0x2c1   : > { %v837_v45 = vadd.f32 %v821_v38, %v1992_v62  ;;  %v871_v9 = vadd.f32 %v855_v53, %v1994_v52 }
 0x2c2   : > { %1350 = vpow2.f32 %v695_v58 }
 0x2c5   : > { %v630_v60 = vpop.permute.xlu1 %629 }
 0x2c6   : > { %v673_v56 = vmul.f32 %v630_v60, %v1810_v21  ;;  %v916_v21 = vmul.f32 %v900_v17, %v1875_v22  ;;  %v721_v58 = vmul.f32 %v630_v60, %v1821_v31  ;;  %v835_v17 = vadd.f32 %v819_v43, %v1952_v51 }
 0x2c8   : > { %v699_v40 = vmul.f32 1.442695, %v673_v56  ;;  %v849_v56 = vmul.f32 %v1977_v37, %v803_v4  ;;  %v1351_v57 = vpop.eup %1350  ;;  %v758_v4 = vmul.f32 %v1919_v44, %v719_v34  ;;  %v873_v44 = vadd.f32 %v857_v10, %v1997_v8 }
 0x2c9   : > { %v774_v15 = vmul.f32 %v1351_v57, %v1888_v42  ;;  %v804_v36 = vmul.f32 %v1351_v57, %v1883_v32  ;;  %v760_v42 = vmul.f32 %v1921_v18, %v721_v58  ;;  %v920_v18 = vmul.f32 %v904_v5, %v1875_v22 }
 0x2ca   : > { %1352 = vpow2.f32 %v699_v40  ;;  %v861_v12 = vmul.f32 %v849_v56, %v1865_v6  ;;  %v883_v6 = vmul.f32 %v1815_v28, %v847_v33  ;;  %v885_v34 = vmul.f32 %v849_v56, %v1843_v50 }
 0x2cb   : > { %1354 = vpow2.f32 %v703_v1  ;;  %v790_v40 = vadd.f32 %v774_v15, %v758_v4  ;;  %v818_v60 = vmul.f32 %v804_v36, %v1911_v11  ;;  %v846_v61 = vmul.f32 %v804_v36, %v1890_v46 }
 0x2cc   : > { %1356 = vpow2.f32 %v707_v2  ;;  %v859_v1 = vmul.f32 %v847_v33, %v1847_v54  ;;  %v877_v56 = vadd.f32 %v861_v12, %v837_v45  ;;  %v903_v33 = vadd.f32 %v871_v9, %v855_v53 }
 0x2cd   : > { %v834_v43 = vadd.f32 %v818_v60, %v790_v40  ;;  %v858_v2 = vmul.f32 %v846_v61, %v1850_v55  ;;  %v882_v11 = vmul.f32 %v1817_v29, %v846_v61  ;;  %v891_v60 = vmul.f32 0.0, %v883_v6 }
 0x2ce   : > { %v875_v58 = vadd.f32 %v859_v1, %v835_v17  ;;  %v893_v29 = vmul.f32 0.0, %v885_v34  ;;  %v919_v53 = vmul.f32 %v903_v33, %v1873_v19  ;;  %v725_v9 = vmul.f32 %v1961_v0, %v1821_v31 }
 0x2cf   : > { %v890_v14 = vmul.f32 0.0, %v882_v11  ;;  %v957_v6 = vsel %vm510_vm13, %v920_v18, 0.0 }
 0x2d0   : > { %v1353_v26 = vpop.eup %1352  ;;  %v907_v17 = vadd.f32 %v891_v60, %v875_v58  ;;  %v909_v34 = vadd.f32 %v893_v29, %v877_v56 }
 0x2d1   : > { %v776_v32 = vmul.f32 %v1353_v26, %v758_v4  ;;  %v2013_v59 = vmul.f32 %v1353_v26, %v1351_v57  ;;  %v1355_v38 = vpop.eup %1354  ;;  %v939_v57 = vsel %vm510_vm13, %v916_v21, 0.0  ;;  %v905_v4 = vadd.f32 %v873_v44, %v857_v10 }
 0x2d2   : > { %v1357_v50 = vpop.eup %1356  ;;  %v808_v61 = vmul.f32 %v1355_v38, %v1353_v26  ;;  %v778_v1 = vmul.f32 %v1355_v38, %v760_v42  ;;  %v923_v58 = vmul.f32 %v907_v17, %v1873_v19 }
 0x2d3   : > { %v792_v46 = vadd.f32 %v776_v32, %v760_v42  ;;  %v820_v15 = vmul.f32 %v2013_v59, %v1924_v27  ;;  %v848_v28 = vmul.f32 %v2013_v59, %v1902_v3  ;;  %v874_v27 = vadd.f32 %v858_v2, %v834_v43 }
 0x2d4   : > { %v762_v3 = vmul.f32 %v1938_v16, %v1965_v47  ;;  %v921_v10 = vmul.f32 %v905_v4, %v1873_v19  ;;  %v850_v44 = vmul.f32 %v808_v61, %v804_v36  ;;  %v948_v47 = vsel %vm510_vm13, %v1989_v39, 0.0 }
 0x2d5   : > { %v649_v54 = vpop.permute.xlu1 %648  ;;  %v836_v55 = vadd.f32 %v820_v15, %v792_v46  ;;  %v860_v32 = vmul.f32 %v848_v28, %v1916_v13  ;;  %v884_v5 = vmul.f32 %v848_v28, %v1881_v35  ;;  %v941_v13 = vadd.f32 %v1936_v23, %v939_v57 }
 0x2d6   : > { %v676_v21 = vmul.f32 %v649_v54, %v1808_v20  ;;  %v822_v35 = vmul.f32 %v808_v61, %v790_v40  ;;  %v906_v42 = vadd.f32 %v890_v14, %v874_v27  ;;  %v780_v43 = vmul.f32 %v1357_v50, %v762_v3 }
 0x2d7   : > { %v876_v45 = vadd.f32 %v860_v32, %v836_v55  ;;  %v892_v12 = vmul.f32 0.0, %v884_v5  ;;  %v794_v2 = vadd.f32 %v778_v1, %v762_v3  ;;  %v949_v23 = vsel %vm510_vm13, %v919_v53, 0.0 }
 0x2d8   : > { %v705_v26 = vmul.f32 1.442695, %v676_v21  ;;  %v958_v31 = vsel %vm510_vm13, %v921_v10, 0.0  ;;  %v810_v0 = vmul.f32 %v1357_v50, %v1355_v38  ;;  %v862_v40 = vmul.f32 %v850_v44, %v1927_v24 }
 0x2d9   : > { %v908_v11 = vadd.f32 %v892_v12, %v876_v45  ;;  %v838_v36 = vadd.f32 %v822_v35, %v794_v2  ;;  %v886_v18 = vmul.f32 %v850_v44, %v1908_v7  ;;  %v925_v14 = vmul.f32 %v909_v34, %v1873_v19 }
 0x2da   : > { %1358 = vpow2.f32 %v705_v26  ;;  %v764_v57 = vmul.f32 %v1940_v25, %v725_v9  ;;  %v922_v28 = vmul.f32 %v906_v42, %v1875_v22  ;;  %v724_v56 = vmul.f32 %v649_v54, %v1819_v30  ;;  %v2163_v26 = vld [vmem:[#allocation20_spill] sm:$0xff]  ;;  %v2164_v9 = vld [vmem:[#allocation19_spill] sm:$0xff] }
 0x2db   : > { %v950_v33 = vadd.f32 %v949_v23, %v948_v47  ;;  %v824_v4 = vmul.f32 %v810_v0, %v792_v46  ;;  %v924_v55 = vmul.f32 %v908_v11, %v1875_v22  ;;  %v942_v50 = vrot.slane %v941_v13, 4  ;;  %v2165_v23 = vld [vmem:[#allocation18_spill] sm:$0xff] }
 0x2dc   : > { %v959_v60 = vadd.f32 %v958_v31, %v957_v6  ;;  %v796_v24 = vadd.f32 %v780_v43, %v764_v57  ;;  %v967_v7 = vsel %vm510_vm13, %v923_v58, 0.0  ;;  %v878_v61 = vadd.f32 %v862_v40, %v838_v36 }
 0x2dd   : > { %v662_v15 = vpop.permute.xlu1 %661  ;;  %v894_v32 = vmul.f32 0.0, %v886_v18  ;;  %v966_v27 = vsel %vm510_vm13, %v922_v28, 0.0  ;;  %v763_v54 = vmul.f32 %v1938_v16, %v724_v56  ;;  %v951_v21 = vrot.slane %v950_v33, 4 }
 0x2de   : > { %v678_v39 = vmul.f32 %v662_v15, %v1808_v20  ;;  %v852_v20 = vmul.f32 %v810_v0, %v2013_v59  ;;  %v840_v17 = vadd.f32 %v824_v4, %v796_v24  ;;  %v975_v3 = vsel %vm510_vm13, %v924_v55, 0.0  ;;  %v2167_v24 = vld [vmem:[#allocation21_spill] sm:$0xff] }
 0x2df   : > { %v976_v1 = vsel %vm510_vm13, %v925_v14, 0.0  ;;  %v726_v10 = vmul.f32 %v662_v15, %v1819_v30  ;;  %v968_v12 = vadd.f32 %v967_v7, %v966_v27  ;;  %v910_v35 = vadd.f32 %v894_v32, %v878_v61 }
 0x2e0   : > { %v709_v38 = vmul.f32 1.442695, %v678_v39  ;;  %v1359_v29 = vpop.eup %1358  ;;  %v864_v16 = vmul.f32 %v852_v20, %v2163_v26  ;;  %v977_v44 = vadd.f32 %v976_v1, %v975_v3  ;;  %v952_v42 = vadd.f32 %v951_v21, %v950_v33 }
 0x2e1   : > { %v779_v46 = vmul.f32 %v1359_v29, %v1948_v41  ;;  %v809_v5 = vmul.f32 %v1359_v29, %v1950_v49  ;;  %v888_v41 = vmul.f32 %v852_v20, %v2164_v9  ;;  %v1213_v49 = vld [vmem:[%s2135_s8] sm:$0xff]  ;;  %v960_v30 = vrot.slane %v959_v60, 4 }
 0x2e2   : > { %1360 = vpow2.f32 %v709_v38  ;;  %v880_v43 = vadd.f32 %v864_v16, %v840_v17  ;;  %1052 = vmatpush.bf16.msra.mxu2 %v1213_v49  ;;  %v765_v15 = vmul.f32 %v1940_v25, %v726_v10  ;;  %v2166_v31 = vrot.slane %v2165_v23, 4 }
 0x2e3   : > { %v795_v45 = vadd.f32 %v779_v46, %v763_v54  ;;  %v823_v59 = vmul.f32 %v809_v5, %v1952_v51  ;;  %v851_v53 = vmul.f32 %v809_v5, %v1959_v63  ;;  %v943_v63 = vadd.f32 %v942_v50, %v941_v13 }
 0x2e4   : > { %v934_v0 = vadd.f32 %v2166_v31, %v2165_v23  ;;  %v969_v36 = vrot.slane %v968_v12, 4  ;;  %v896_v40 = vmul.f32 0.0, %v888_v41  ;;  %v978_v18 = vrot.slane %v977_v44, 4 }
 0x2e5   : > { %v839_v6 = vadd.f32 %v823_v59, %v795_v45  ;;  %v863_v34 = vmul.f32 %v851_v53, %v1994_v52  ;;  %v887_v51 = vmul.f32 %v851_v53, %v1974_v48  ;;  %v926_v48 = vmul.f32 %v910_v35, %v1875_v22 }
 0x2e6   : > { %v944_v14 = vrot.slane %v943_v63, 2  ;;  %v953_v56 = vrot.slane %v952_v42, 2  ;;  %v961_v25 = vadd.f32 %v960_v30, %v959_v60  ;;  %v912_v33 = vadd.f32 %v896_v40, %v880_v43 }
 0x2e7   : > { %v879_v2 = vadd.f32 %v863_v34, %v839_v6  ;;  %v895_v11 = vmul.f32 0.0, %v887_v51  ;;  %v970_v55 = vadd.f32 %v969_v36, %v968_v12  ;;  %v979_v20 = vadd.f32 %v978_v18, %v977_v44 }
 0x2e8   : > { %v1361_v47 = vpop.eup %1360  ;;  %v984_v61 = vsel %vm510_vm13, %v926_v48, 0.0  ;;  %v954_v60 = vadd.f32 %v953_v56, %v952_v42  ;;  %v962_v46 = vrot.slane %v961_v25, 2  ;;  %v928_v21 = vmul.f32 %v912_v33, %v1875_v22 }
 0x2e9   : > { %v781_v58 = vmul.f32 %v1361_v47, %v763_v54  ;;  %v811_v52 = vmul.f32 %v1361_v47, %v1359_v29  ;;  %v911_v13 = vadd.f32 %v895_v11, %v879_v2  ;;  %v935_v29 = vrot.slane %v934_v0, 2 }
 0x2ea   : > { %v945_v54 = vadd.f32 %v944_v14, %v943_v63  ;;  %v971_v5 = vrot.slane %v970_v55, 2  ;;  %v980_v1 = vrot.slane %v979_v20, 2  ;;  %v955_v10 = vrot.slane %v954_v60, 1 }
 0x2eb   : > { %v797_v39 = vadd.f32 %v781_v58, %v765_v15  ;;  %v825_v57 = vmul.f32 %v811_v52, %v1992_v62  ;;  %v853_v28 = vmul.f32 %v811_v52, %v1977_v37  ;;  %v927_v4 = vmul.f32 %v911_v13, %v1873_v19 }
 0x2ec   : > { %v946_v53 = vrot.slane %v945_v54, 1  ;;  %v963_v12 = vadd.f32 %v962_v46, %v961_v25  ;;  %v972_v26 = vadd.f32 %v971_v5, %v970_v55  ;;  %v993_v9 = vsel %vm510_vm13, %v928_v21, 0.0 }
 0x2ed   : > { %v841_v38 = vadd.f32 %v825_v57, %v797_v39  ;;  %v865_v50 = vmul.f32 %v853_v28, %v1997_v8  ;;  %v889_v7 = vmul.f32 %v853_v28, %v2167_v24  ;;  %v985_v32 = vsel %vm510_vm13, %v927_v4, 0.0  ;;  %v1317_v57 = vld [vmem:[%s2134_s7] ss:$0 sm:$0xff]  ;;  %v2168_v28 = vld [vmem:[#allocation17_spill] sm:$0xff] }
 0x2ee   : > { %v986_v62 = vadd.f32 %v985_v32, %v984_v61  ;;  %v936_v8 = vadd.f32 %v935_v29, %v934_v0  ;;  %v981_v49 = vadd.f32 %v980_v1, %v979_v20  ;;  %v947_v6 = vadd.f32 %v946_v53, %v945_v54 }
 0x2ef   : > { %v881_v27 = vadd.f32 %v865_v50, %v841_v38  ;;  %v897_v37 = vmul.f32 0.0, %v889_v7  ;;  %v964_v34 = vrot.slane %v963_v12, 1  ;;  %v956_v47 = vadd.f32 %v955_v10, %v954_v60  ;;  %v1362_v38 = vld [vmem:[%s1770_s5] sm:$0xff] }
 0x2f0   : > { %v987_v17 = vrot.slane %v986_v62, 4  ;;  %v937_v35 = vrot.slane %v936_v8, 1  ;;  %v973_v63 = vrot.slane %v972_v26, 1  ;;  %v982_v42 = vrot.slane %v981_v49, 1 }
 0x2f1   : > { %v913_v3 = vadd.f32 %v897_v37, %v881_v27  ;;  %v965_v11 = vadd.f32 %v964_v34, %v963_v12  ;;  %v1031_v56 = vmul.f32 %v1317_v57, %v2168_v28 }
 0x2f2   : > { %v988_v45 = vadd.f32 %v987_v17, %v986_v62  ;;  %v974_v23 = vadd.f32 %v973_v63, %v972_v26  ;;  %v983_v31 = vadd.f32 %v982_v42, %v981_v49 }
 0x2f3   : > { %v929_v59 = vmul.f32 %v913_v3, %v1873_v19  ;;  %v938_v19 = vadd.f32 %v937_v35, %v936_v8 }
 0x2f4   : > { %v989_v16 = vrot.slane %v988_v45, 2 }
 0x2f5   : > { %v994_v41 = vsel %vm510_vm13, %v929_v59, 0.0  ;;  %v1011_v2 = vsel %vm1010_vm3, %v947_v6, %v938_v19 }
 0x2f6   : > { %v995_v44 = vadd.f32 %v994_v41, %v993_v9  ;;  %v990_v22 = vadd.f32 %v989_v16, %v988_v45  ;;  %v1013_v58 = vsel %vm1012_vm4, %v956_v47, %v1011_v2 }
 0x2f7   : > { %v1015_v40 = vsel %vm1014_vm5, %v965_v11, %v1013_v58 }
 0x2f8   : > { %v996_v51 = vrot.slane %v995_v44, 4  ;;  %v991_v43 = vrot.slane %v990_v22, 1  ;;  %v1017_v48 = vsel %vm1016_vm6, %v974_v23, %v1015_v40 }
 0x2f9   : > { %v1019_v18 = vsel %vm1018_vm7, %v983_v31, %v1017_v48 }
 0x2fa   : > { %v997_v30 = vadd.f32 %v996_v51, %v995_v44  ;;  %v992_v36 = vadd.f32 %v991_v43, %v990_v22 }
 0x2fc   : > { %v998_v15 = vrot.slane %v997_v30, 2  ;;  %v1021_v39 = vsel %vm1020_vm8, %v992_v36, %v1019_v18 }
 0x2fe   : > { %v999_v0 = vadd.f32 %v998_v15, %v997_v30 }
 0x300   : > { %v1000_v52 = vrot.slane %v999_v0, 1 }
 0x302   : > { %v1001_v13 = vadd.f32 %v1000_v52, %v999_v0 }
 0x304   : > { %v1023_v14 = vsel %vm1022_vm9, %v1001_v13, %v1021_v39 }
 0x305   : > { %1025 = vst.msk [vmem:[#allocation2] sm:$0xff] %vm510_vm13, %v1023_v14 }
 0x30c   : > { %v1026_v25 = vld [vmem:[#allocation2] sm:$0xff] }
 0x30d   : > { %v1032_v33 = vadd.f32 %v1031_v56, %v1026_v25 }
 0x30f   : > { %v1033_v4 = vpack.c.bf16 %v1032_v33, %v1032_v33 }
 0x311   : > { %1208 = vmatmul.msk.bf16.vlgmr.msra.gmra.mxu2 %vm510_vm13, %v1033_v4 }
 0x394   : > { %v1054_v55 = vpop.f32.mrf.mxu2 }
 0x395   : > { %v1055_v50 = vadd.f32 %v1362_v38, %v1054_v55 }
 0x397   : > { %1058 = vst.msk [vmem:[%s415_s3] sm:$0xff] %vm420_vm1, %v1055_v50 }
 0x398   : > { %1540 = shalt.err (!%p1537_p9)
}
 0x399   : > { %1232 = dma.vmem_to_hbm [thread:$0]  (%p1733_p4), %s1073_s4, 128, %s1075_s6, %s1060_s17  }
 0x39c   : > { %v1056_v24 = vpop.f32.mrf.mxu2 }
 0x39d PF: > { %s1086_s29 = sand.u32 1, %s1575_s30   ;;  %p2169_p10 = scmp.ge.s32.totalorder %s1587_s12, 2 }
 0x39e   : > { %s1087_s5 = scalar_lea.sflag [#allocation5], %s1086_s29 }
 0x39f   : > { %p1252_p13 = pnand %p2169_p10, %p1737_p6 }
 0x3a1   : > { %p1253_p11 = pneg %p1252_p13 }
 0x3a3   : > { %1570 = dma.done.wait (%p1253_p11), %s1087_s5, 128  }
 0x3a4   : > { %1572 = vsyncadd (%p1253_p11), %s1087_s5, 4294967168  ;;  %p24_p0 = scmp.ge.s32.totalorder %s1707_s25, 4   ;;  %s2170_s30 = smov %s1579_s10 }
 0x3a5   : > { %s2171_s10 = smov %s1583_s11  ;;  %s2172_s11 = smov %s1718_s26 }
 0x3a6   : > { %s2173_s12 = smov %s1707_s25  ;;  %26 = sbr.rel (!%p24_p0) target bundleno = 12 (0xc), region = 117 }
 0x3ab   :  { %1093 = vsyncpa [#allocation4], 1 }
 0x3ac   :  { %1095 = vsyncpa [#allocation4 + $0x1], 1 }
 0x3ad   :  { %1096 = vsyncpa [#allocation7], 1 }
 0x3ae   :  { %1097 = vsyncpa [#allocation10], 1 }
 0x3af   :  { %1098 = vsyncpa [#allocation5], 1 }
 0x3b0   :  { %1100 = vsyncpa [#allocation5 + $0x1], 1 }

</bundles_post_ra>
